<compile_context>
chip_gen: v6e
topology: v6e:2x2x1
jax: 0.10.0
libtpu: 0.0.40
codegen_flags: <defaults>
</compile_context>

<pallas_src>
import functools

import jax
import jax.numpy as jnp
from jax.experimental import pallas as pl
from jax.experimental.pallas import tpu as pltpu

HIDDEN = 256


def _round_up(n, m):
    return ((n + m - 1) // m) * m


def actor_critic_kernel(x_ref, w1_ref, b1_ref, w2_ref, b2_ref,
                        wh_ref, bh_ref, out_ref, *, action_dim):
    # Hoist the actor/critic column mask above the matmuls (VPU work overlaps
    # the MXU phase instead of sitting in the epilogue).
    col = jax.lax.broadcasted_iota(jnp.int32, out_ref.shape, dimension=1)
    is_actor_col = col < action_dim

    # fc_comun1 + ReLU  (in-kernel fp32->bf16 cast of x; fp32 accumulate)
    x_bf16 = x_ref[...].astype(jnp.bfloat16)
    h1 = jnp.dot(x_bf16, w1_ref[...],
                 preferred_element_type=jnp.float32) + b1_ref[...]
    h1 = jnp.maximum(h1, 0.0)

    # fc_comun2 + ReLU
    h2 = jnp.dot(h1.astype(jnp.bfloat16), w2_ref[...],
                 preferred_element_type=jnp.float32) + b2_ref[...]
    h2 = jnp.maximum(h2, 0.0)

    # fused actor-mean + critic head: one lane-dense matmul; tanh only kept on
    # the actor-mean columns (critic column A passes through untouched).
    head = jnp.dot(h2.astype(jnp.bfloat16), wh_ref[...],
                   preferred_element_type=jnp.float32) + bh_ref[...]
    out_ref[...] = jnp.where(is_actor_col, jnp.tanh(head), head)


def _choose_batch_tile(B):
    """Batch tile: 16-row aligned (bf16 sublane pack), up to 256 rows, and
    forced to give a >=2-step grid once B > 32 so the 'parallel' batch axis
    actually maps onto both v7x TensorCores."""
    if B <= 32:
        return _round_up(B, 16)
    half = -(-B // 2)                       # ceil(B / 2)
    return min(256, _round_up(half, 16))


def _const_spec(a):
    # Constant index_map -> tile DMA'd once and stays VMEM-resident.
    return pl.BlockSpec(a.shape, lambda i: (0, 0))


def red_actor_critico_forward(x, kparams, *, use_pallas=True):
    """Returns (media, std, valor).

    media : (B, A)  tanh-squashed action mean
    std   : (A,)    clamped std of the Normal action distribution
    valor : (B, 1)  critic value
    # TODO(synk): torch.distributions.Normal has no Pallas equivalent; the
    # kernel returns its (media, std) parameters instead of a distribution.
    """
    if not use_pallas:
        # Launch-overhead-bound regime (tiny RL batches): plain XLA dot chain.
        return reference_forward(x, kparams)

    A = int(kparams["action_dim"])
    B, obs_dim = x.shape

    w1, b1 = kparams["w1"], kparams["b1"]
    w2, b2 = kparams["w2"], kparams["b2"]
    wh, bh = kparams["w_head"], kparams["b_head"]
    head_pad = wh.shape[1]                  # round_up(A + 1, 128)

    tb = _choose_batch_tile(B)
    b_pad = _round_up(B, tb)
    if b_pad != B:
        x = jnp.pad(x, ((0, b_pad - B), (0, 0)))

    in_specs = [
        pl.BlockSpec((tb, obs_dim), lambda i: (i, 0)),   # x tiles over batch
        _const_spec(w1), _const_spec(b1),
        _const_spec(w2), _const_spec(b2),
        _const_spec(wh), _const_spec(bh),
    ]
    out_spec = pl.BlockSpec((tb, head_pad), lambda i: (i, 0))

    flops = 2 * b_pad * (obs_dim * HIDDEN + HIDDEN * HIDDEN + HIDDEN * head_pad)
    bytes_accessed = (x.size * 4
                      + (w1.size + w2.size + wh.size) * 2
                      + (b1.size + b2.size + bh.size) * 4
                      + b_pad * head_pad * 4)

    out = pl.pallas_call(
        functools.partial(actor_critic_kernel, action_dim=A),
        out_shape=jax.ShapeDtypeStruct((b_pad, head_pad), jnp.float32),
        grid=(b_pad // tb,),
        in_specs=in_specs,
        out_specs=out_spec,
        compiler_params=pltpu.CompilerParams(
            dimension_semantics=("parallel",)),   # v7x: batch over both TCs
        cost_estimate=pl.CostEstimate(
            flops=flops,
            transcendentals=b_pad * head_pad,
            bytes_accessed=bytes_accessed),
    )(x, w1, b1, w2, b2, wh, bh)

    media = out[:B, :A]
    valor = out[:B, A:A + 1]
    # std is input-invariant -> plain JAX, 1-D like the torch parameter.
    std = jnp.clip(jnp.exp(kparams["log_std"]), 0.1, 1.0)
    return media, std, valor


def init_params(key, obs_dim, action_dim, hidden=HIDDEN):
    """Deterministic synthetic init mimicking nn.Linear default init (fp32)."""
    ks = jax.random.split(key, 8)

    def lin(kw, kb, fan_in, fan_out):
        bound = 1.0 / jnp.sqrt(fan_in)
        w = jax.random.uniform(kw, (fan_in, fan_out), jnp.float32, -bound, bound)
        b = jax.random.uniform(kb, (1, fan_out), jnp.float32, -bound, bound)
        return w, b

    w1, b1 = lin(ks[0], ks[1], obs_dim, hidden)
    w2, b2 = lin(ks[2], ks[3], hidden, hidden)
    w_mu, b_mu = lin(ks[4], ks[5], hidden, action_dim)
    w_v, b_v = lin(ks[6], ks[7], hidden, 1)
    log_std = jnp.zeros((action_dim,), jnp.float32)   # torch.full((A,), 0.0)
    return dict(w1=w1, b1=b1, w2=w2, b2=b2, w_mu=w_mu, b_mu=b_mu,
                log_std=log_std, w_v=w_v, b_v=b_v)


def prepare_kernel_params(p):
    """One-time prep: fuse the two heads, pad to a 128-lane multiple that also
    holds the critic column (fixes A >= 127), cast weights to bf16."""
    hidden, A = p["w_mu"].shape
    head_pad = _round_up(A + 1, 128)
    w_head = jnp.zeros((hidden, head_pad), jnp.float32)
    w_head = w_head.at[:, :A].set(p["w_mu"]).at[:, A:A + 1].set(p["w_v"])
    b_head = jnp.zeros((1, head_pad), jnp.float32)
    b_head = b_head.at[:, :A].set(p["b_mu"]).at[:, A:A + 1].set(p["b_v"])
    return dict(
        w1=p["w1"].astype(jnp.bfloat16), b1=p["b1"],
        w2=p["w2"].astype(jnp.bfloat16), b2=p["b2"],
        w_head=w_head.astype(jnp.bfloat16), b_head=b_head,
        log_std=p["log_std"], action_dim=A)


def reference_forward(x, kp):
    """Pure-JAX reference following the same bf16-weight / fp32-accumulate path."""
    A = int(kp["action_dim"])
    xb = x.astype(jnp.bfloat16)
    h1 = jnp.maximum(
        jnp.dot(xb, kp["w1"], preferred_element_type=jnp.float32) + kp["b1"], 0.0)
    h2 = jnp.maximum(
        jnp.dot(h1.astype(jnp.bfloat16), kp["w2"],
                preferred_element_type=jnp.float32) + kp["b2"], 0.0)
    head = jnp.dot(h2.astype(jnp.bfloat16), kp["w_head"],
                   preferred_element_type=jnp.float32) + kp["b_head"]
    media = jnp.tanh(head[:, :A])
    valor = head[:, A:A + 1]
    std = jnp.clip(jnp.exp(kp["log_std"]), 0.1, 1.0)
    return media, std, valor


if __name__ == "__main__":
    key = jax.random.PRNGKey(0)
    k_params, k_x = jax.random.split(key)

    batch = 8
    obs_dim = 16
    action_dim = 4

    params = init_params(k_params, obs_dim, action_dim)
    kparams = prepare_kernel_params(params)
    x = jax.random.normal(k_x, (batch, obs_dim), jnp.float32)

    media, std, valor = red_actor_critico_forward(x, kparams, use_pallas=True)
    jax.block_until_ready((media, std, valor))

    # sanity check against pure-JAX reference on the same bf16-weight path
    m_ref, s_ref, v_ref = reference_forward(x, kparams)
    assert media.shape == (batch, action_dim)
    assert std.shape == (action_dim,)
    assert valor.shape == (batch, 1)
    assert jnp.allclose(media, m_ref, atol=1e-4, rtol=1e-4), "media mismatch"
    assert jnp.allclose(std, s_ref, atol=1e-6), "std mismatch"
    assert jnp.allclose(valor, v_ref, atol=1e-4, rtol=1e-4), "valor mismatch"

    print("KERNEL_OK")
</pallas_src>

<mosaic_0001>
module attributes {stable_mosaic.version = 11 : i64} {
  func.func @actor_critic_kernel(%arg0: i32, %arg1: memref<16x16xf32, #tpu.memory_space<vmem>>, %arg2: memref<16x256xbf16, #tpu.memory_space<vmem>>, %arg3: memref<1x256xf32, #tpu.memory_space<vmem>>, %arg4: memref<256x256xbf16, #tpu.memory_space<vmem>>, %arg5: memref<1x256xf32, #tpu.memory_space<vmem>>, %arg6: memref<256x128xbf16, #tpu.memory_space<vmem>>, %arg7: memref<1x128xf32, #tpu.memory_space<vmem>>, %arg8: memref<16x128xf32, #tpu.memory_space<vmem>>) attributes {dimension_semantics = [#tpu.dimension_semantics<parallel>], iteration_bounds = array<i64: 1>, scalar_prefetch = 0 : i64, scratch_operands = 0 : i64, tpu.core_type = #tpu.core_type<tc>, window_params = [{transform_indices = @transform_0, window_bounds = array<i64: 16, 16>}, {pipeline_mode = #tpu.pipeline_mode<synchronous>, transform_indices = @transform_1, window_bounds = array<i64: 16, 256>}, {pipeline_mode = #tpu.pipeline_mode<synchronous>, transform_indices = @transform_2, window_bounds = array<i64: 1, 256>}, {pipeline_mode = #tpu.pipeline_mode<synchronous>, transform_indices = @transform_3, window_bounds = array<i64: 256, 256>}, {pipeline_mode = #tpu.pipeline_mode<synchronous>, transform_indices = @transform_4, window_bounds = array<i64: 1, 256>}, {pipeline_mode = #tpu.pipeline_mode<synchronous>, transform_indices = @transform_5, window_bounds = array<i64: 256, 128>}, {pipeline_mode = #tpu.pipeline_mode<synchronous>, transform_indices = @transform_6, window_bounds = array<i64: 1, 128>}, {transform_indices = @transform_7, window_bounds = array<i64: 16, 128>}]} {
    %0 = tpu.iota {dimensions = array<i32: 1>} : vector<16x128xi32>
    %c4_i32 = arith.constant 4 : i32
    %1 = vector.broadcast %c4_i32 : i32 to vector<16x128xi32>
    %2 = arith.cmpi slt, %0, %1 : vector<16x128xi32>
    %c0 = arith.constant 0 : index
    %c0_0 = arith.constant 0 : index
    %3 = vector.load %arg1[%c0, %c0_0] : memref<16x16xf32, #tpu.memory_space<vmem>>, vector<16x16xf32>
    %4 = arith.truncf %3 : vector<16x16xf32> to vector<16x16xbf16>
    %c0_1 = arith.constant 0 : index
    %c0_2 = arith.constant 0 : index
    %5 = vector.load %arg2[%c0_1, %c0_2] : memref<16x256xbf16, #tpu.memory_space<vmem>>, vector<16x256xbf16>
    %cst = arith.constant dense<0.000000e+00> : vector<16x256xf32>
    %6 = tpu.matmul %4, %5, %cst {dimension_numbers = #tpu.dot_dimension_numbers<[1], [0], [0], [1], [0, 0, 1, 1], [], []>} : vector<16x16xbf16>, vector<16x256xbf16>, vector<16x256xf32> -> vector<16x256xf32>
    %c0_3 = arith.constant 0 : index
    %c0_4 = arith.constant 0 : index
    %7 = vector.load %arg3[%c0_3, %c0_4] : memref<1x256xf32, #tpu.memory_space<vmem>>, vector<1x256xf32>
    %8 = vector.broadcast %7 : vector<1x256xf32> to vector<16x256xf32>
    %9 = arith.addf %6, %8 : vector<16x256xf32>
    %cst_5 = arith.constant 0.000000e+00 : f32
    %10 = vector.broadcast %cst_5 : f32 to vector<16x256xf32>
    %11 = arith.maximumf %9, %10 : vector<16x256xf32>
    %12 = arith.truncf %11 : vector<16x256xf32> to vector<16x256xbf16>
    %c0_6 = arith.constant 0 : index
    %c0_7 = arith.constant 0 : index
    %13 = vector.load %arg4[%c0_6, %c0_7] : memref<256x256xbf16, #tpu.memory_space<vmem>>, vector<256x256xbf16>
    %cst_8 = arith.constant dense<0.000000e+00> : vector<16x256xf32>
    %14 = tpu.matmul %12, %13, %cst_8 {dimension_numbers = #tpu.dot_dimension_numbers<[1], [0], [0], [1], [0, 0, 1, 1], [], []>} : vector<16x256xbf16>, vector<256x256xbf16>, vector<16x256xf32> -> vector<16x256xf32>
    %c0_9 = arith.constant 0 : index
    %c0_10 = arith.constant 0 : index
    %15 = vector.load %arg5[%c0_9, %c0_10] : memref<1x256xf32, #tpu.memory_space<vmem>>, vector<1x256xf32>
    %16 = vector.broadcast %15 : vector<1x256xf32> to vector<16x256xf32>
    %17 = arith.addf %14, %16 : vector<16x256xf32>
    %cst_11 = arith.constant 0.000000e+00 : f32
    %18 = vector.broadcast %cst_11 : f32 to vector<16x256xf32>
    %19 = arith.maximumf %17, %18 : vector<16x256xf32>
    %20 = arith.truncf %19 : vector<16x256xf32> to vector<16x256xbf16>
    %c0_12 = arith.constant 0 : index
    %c0_13 = arith.constant 0 : index
    %21 = vector.load %arg6[%c0_12, %c0_13] : memref<256x128xbf16, #tpu.memory_space<vmem>>, vector<256x128xbf16>
    %cst_14 = arith.constant dense<0.000000e+00> : vector<16x128xf32>
    %22 = tpu.matmul %20, %21, %cst_14 {dimension_numbers = #tpu.dot_dimension_numbers<[1], [0], [0], [1], [0, 0, 1, 1], [], []>} : vector<16x256xbf16>, vector<256x128xbf16>, vector<16x128xf32> -> vector<16x128xf32>
    %c0_15 = arith.constant 0 : index
    %c0_16 = arith.constant 0 : index
    %23 = vector.load %arg7[%c0_15, %c0_16] : memref<1x128xf32, #tpu.memory_space<vmem>>, vector<1x128xf32>
    %24 = vector.broadcast %23 : vector<1x128xf32> to vector<16x128xf32>
    %25 = arith.addf %22, %24 : vector<16x128xf32>
    %26 = math.tanh %25 : vector<16x128xf32>
    %27 = arith.select %2, %26, %25 : vector<16x128xi1>, vector<16x128xf32>
    %c0_17 = arith.constant 0 : index
    %c0_18 = arith.constant 0 : index
    %28 = vector.load %arg8[%c0_17, %c0_18] : memref<16x128xf32, #tpu.memory_space<vmem>>, vector<16x128xf32>
    tpu.vector_store %arg8[%c0_17, %c0_18], %27 {strides = array<i32>} : memref<16x128xf32, #tpu.memory_space<vmem>>, vector<16x128xf32>,
    return
  }
  func.func @transform_0(%arg0: i32) -> (i32, i32) {
    %c0_i32 = arith.constant 0 : i32
    %c0_i32_0 = arith.constant 0 : i32
    return %arg0, %c0_i32 : i32, i32
  }
  func.func @transform_1(%arg0: i32) -> (i32, i32) {
    %c0_i32 = arith.constant 0 : i32
    %c0_i32_0 = arith.constant 0 : i32
    %c0_i32_1 = arith.constant 0 : i32
    return %c0_i32, %c0_i32_0 : i32, i32
  }
  func.func @transform_2(%arg0: i32) -> (i32, i32) {
    %c0_i32 = arith.constant 0 : i32
    %c0_i32_0 = arith.constant 0 : i32
    %c0_i32_1 = arith.constant 0 : i32
    return %c0_i32, %c0_i32_0 : i32, i32
  }
  func.func @transform_3(%arg0: i32) -> (i32, i32) {
    %c0_i32 = arith.constant 0 : i32
    %c0_i32_0 = arith.constant 0 : i32
    %c0_i32_1 = arith.constant 0 : i32
    return %c0_i32, %c0_i32_0 : i32, i32
  }
  func.func @transform_4(%arg0: i32) -> (i32, i32) {
    %c0_i32 = arith.constant 0 : i32
    %c0_i32_0 = arith.constant 0 : i32
    %c0_i32_1 = arith.constant 0 : i32
    return %c0_i32, %c0_i32_0 : i32, i32
  }
  func.func @transform_5(%arg0: i32) -> (i32, i32) {
    %c0_i32 = arith.constant 0 : i32
    %c0_i32_0 = arith.constant 0 : i32
    %c0_i32_1 = arith.constant 0 : i32
    return %c0_i32, %c0_i32_0 : i32, i32
  }
  func.func @transform_6(%arg0: i32) -> (i32, i32) {
    %c0_i32 = arith.constant 0 : i32
    %c0_i32_0 = arith.constant 0 : i32
    %c0_i32_1 = arith.constant 0 : i32
    return %c0_i32, %c0_i32_0 : i32, i32
  }
  func.func @transform_7(%arg0: i32) -> (i32, i32) {
    %c0_i32 = arith.constant 0 : i32
    %c0_i32_0 = arith.constant 0 : i32
    return %arg0, %c0_i32 : i32, i32
  }
}

</mosaic_0001>

<bundles_post_ra>
// kernel: tpu_custom_call.1
= control target key start
LH: loop header
LB: loop body
LE: loop exit
PB: predicated region body
PF: predicated region fallthrough
CT: control target
= control target key end

     0   :  { %12 = vsyncpa [#allocation3], 0  ;;  %s971_s0 = inlined_call_operand.hbm [shape: f32[16,16], index: 0, kind: input, shape index: {}]   ;;  %s972_s1 = inlined_call_operand.hbm [shape: bf16[16,256], index: 1, kind: input, shape index: {}]   ;;  %s973_s2 = inlined_call_operand.vmem [shape: f32[1,256], index: 2, kind: input, shape index: {}]   ;;  %s974_s3 = inlined_call_operand.hbm [shape: bf16[256,256], index: 3, kind: input, shape index: {}]   ;;  %s975_s4 = inlined_call_operand.vmem [shape: f32[1,256], index: 4, kind: input, shape index: {}]   ;;  %s976_s5 = inlined_call_operand.hbm [shape: bf16[256,128], index: 5, kind: input, shape index: {}]   ;;  %s977_s6 = inlined_call_operand.vmem [shape: f32[1,128], index: 6, kind: input, shape index: {}]   ;;  %s978_s7 = inlined_call_operand.hbm [shape: f32[16,128], index: 7, kind: output, shape index: {}]  }
   0x1   :  { %13 = vsyncpa [#allocation6], 0 }
   0x2   :  { %14 = vsyncpa [#allocation9], 0 }
   0x3   :  { %15 = vsyncpa [#allocation4], 0  ;;  %s883_s24 = smov [#allocation5]   ;;  %s884_s26 = smov [#allocation2]  }
   0x4   :  { %s33_s25 = sshll.u32 %s883_s24, 4  ;;  %s21_s27 = sshll.u32 %s884_s26, 4  ;;  %s34_s25 = int_to_ptr.vmem [resolvable:$true] %s33_s25  ;;  %s22_s27 = int_to_ptr.vmem [resolvable:$true] %s21_s27 }
   0x5   :  { %s783_s28 = scalar_lea.vmem %s34_s25, 256  ;;  %p788_p1 = scmp.lt.s32.totalorder %s34_s25, %s34_s25 }
   0x6   :  { %p784_p0 = scmp.ne.s32.totalorder %s34_s25, %s783_s28  ;;  %p789_p2 = scmp.lt.s32.totalorder %s783_s28, %s783_s28 }
   0x8   :  { %p790_p3 = por %p789_p2, %p788_p1 }
   0xa   :  { %p791_p4 = pnand %p790_p3, %p784_p0 }
   0xc   :  { %794 = shalt.err (!%p791_p4)
}
   0xd   :  { %s885_s29 = smov 128   ;;  %s886_s30 = smov 8  }
   0xe   :  { %39 = dma.hbm_to_vmem [thread:$0]  %s972_s1, 256, %s34_s25, [#allocation6], %s885_s29, %s885_s29, %s886_s30  }
   0xf   :  { %s803_s10 = scalar_lea.vmem %s22_s27, 256  ;;  %p808_p6 = scmp.lt.s32.totalorder %s22_s27, %s22_s27 }
  0x10   :  { %p804_p5 = scmp.ne.s32.totalorder %s22_s27, %s803_s10  ;;  %p809_p7 = scmp.lt.s32.totalorder %s803_s10, %s803_s10 }
  0x12   :  { %p810_p8 = por %p809_p7, %p808_p6 }
  0x14   :  { %p811_p9 = pnand %p810_p8, %p804_p5 }
  0x16   :  { %814 = shalt.err (!%p811_p9)
}
  0x17   :  { %27 = dma.hbm_to_vmem [thread:$0]  %s971_s0, 256, %s22_s27, [#allocation3], %s885_s29, %s885_s29, %s886_s30  }
  0x18   :  { %s887_s13 = smov [#allocation7]   ;;  %s888_s15 = smov [#allocation8]  }
  0x19   :  { %s47_s14 = sshll.u32 %s887_s13, 4  ;;  %s61_s16 = sshll.u32 %s888_s15, 4  ;;  %s48_s14 = int_to_ptr.vmem [resolvable:$true] %s47_s14  ;;  %s62_s16 = int_to_ptr.vmem [resolvable:$true] %s61_s16 }
  0x1a   :  { %s823_s1 = scalar_lea.vmem %s48_s14, 4096  ;;  %p828_p11 = scmp.lt.s32.totalorder %s48_s14, %s48_s14 }
  0x1b   :  { %p824_p10 = scmp.ne.s32.totalorder %s48_s14, %s823_s1  ;;  %p829_p12 = scmp.lt.s32.totalorder %s823_s1, %s823_s1 }
  0x1d   :  { %p830_p13 = por %p829_p12, %p828_p11 }
  0x1f   :  { %p831_p0 = pnand %p830_p13, %p824_p10 }
  0x21   :  { %834 = shalt.err (!%p831_p0)
}
  0x22   :  { %53 = dma.hbm_to_vmem [thread:$0]  %s974_s3, 4096, %s48_s14, [#allocation6], %s885_s29, %s885_s29, %s886_s30  }
  0x23   :  { %s843_s0 = scalar_lea.vmem %s62_s16, 2048  ;;  %p848_p2 = scmp.lt.s32.totalorder %s62_s16, %s62_s16 }
  0x24   :  { %p844_p1 = scmp.ne.s32.totalorder %s62_s16, %s843_s0  ;;  %p849_p3 = scmp.lt.s32.totalorder %s843_s0, %s843_s0 }
  0x26   :  { %p850_p4 = por %p849_p3, %p848_p2 }
  0x28   :  { %p851_p5 = pnand %p850_p4, %p844_p1 }
  0x2a   :  { %854 = shalt.err (!%p851_p5)
}
  0x2b   :  { %s889_s19 = smov 64   ;;  %s890_s20 = smov 4  }
  0x2c   :  { %67 = dma.hbm_to_vmem [thread:$0]  %s976_s5, 2048, %s62_s16, [#allocation9], %s889_s19, %s889_s19, %s890_s20  }
  0x2d   :  { %875 = dma.done.wait [#allocation3], 256  }
  0x2e   :  { %876 = vsyncadd [#allocation3], 4294967040 }
  0x2f   :  { %877 = dma.done.wait [#allocation6], 4352  }
  0x30   :  { %878 = vsyncadd [#allocation6], 4294962944 }
  0x31   :  { %879 = dma.done.wait [#allocation9], 2048  }
  0x32   :  { %880 = vsyncadd [#allocation9], 4294965248  ;;  %v891_v0 = vmov 0   ;;  %v704_v1 = vld [vmem:[#allocation5 + $0x4] ss:$8 sps:$4 sm:$0xff]   ;;  %v86_v3 = vld [vmem:[#allocation2] sm:$0xff]  ;;  %v83_v48 = vlaneseq }
  0x33   :  { %149 = vmatprep.mubr.bf16.mxu0 %v891_v0  ;;  %v706_v2 = vld [vmem:[#allocation5] ss:$8 sps:$4 sm:$0xff]   ;;  %v87_v4 = vld [vmem:[#allocation2 + $0x8] sm:$0xff]  ;;  %131 = vmatprep.subr.bf16.mxu0 %v704_v1  ;;  %v707_v6 = vld [vmem:[#allocation7 + $0x74] ss:$8 sps:$4 sm:$0xff]   ;;  %vm113_vm0 = vcmask 130048  }
  0x34   :  { %v88_v5 = vpack.c.bf16 %v87_v4, %v86_v3  ;;  %132 = vmatpush1.bf16.msra.mxu0 %v706_v2  ;;  %v709_v7 = vld [vmem:[#allocation7 + $0x70] ss:$8 sps:$4 sm:$0xff]   ;;  %370 = vmatprep.subr.bf16.mxu1 %v707_v6  ;;  %v710_v8 = vld [vmem:[#allocation7 + $0x64] ss:$8 sps:$4 sm:$0xff]   ;;  %v712_v9 = vld [vmem:[#allocation7 + $0x60] ss:$8 sps:$4 sm:$0xff]  }
  0x35   :  { %371 = vmatpush1.bf16.msra.mxu1 %v709_v7  ;;  %v713_v10 = vld [vmem:[#allocation7 + $0x54] ss:$8 sps:$4 sm:$0xff]   ;;  %v715_v11 = vld [vmem:[#allocation7 + $0x50] ss:$8 sps:$4 sm:$0xff]   ;;  %v716_v12 = vld [vmem:[#allocation7 + $0x44] ss:$8 sps:$4 sm:$0xff]  }
  0x36   :  { %372 = vmatprep.subr.bf16.mxu1 %v710_v8  ;;  %v718_v13 = vld [vmem:[#allocation7 + $0x40] ss:$8 sps:$4 sm:$0xff]   ;;  %v719_v14 = vld [vmem:[#allocation7 + $0x34] ss:$8 sps:$4 sm:$0xff]   ;;  %v721_v15 = vld [vmem:[#allocation7 + $0x30] ss:$8 sps:$4 sm:$0xff]  }
  0x37   :  { %622 = vmatmul.mubr.msk.bf16.vlgmr.msra.gmra.mxu0 %vm113_vm0, %v88_v5  ;;  %v722_v16 = vld [vmem:[#allocation7 + $0x24] ss:$8 sps:$4 sm:$0xff]   ;;  %v724_v17 = vld [vmem:[#allocation7 + $0x20] ss:$8 sps:$4 sm:$0xff]   ;;  %v725_v18 = vld [vmem:[#allocation7 + $0x14] ss:$8 sps:$4 sm:$0xff]  }
  0x38   :  { %v727_v19 = vld [vmem:[#allocation7 + $0x10] ss:$8 sps:$4 sm:$0xff]   ;;  %v728_v20 = vld [vmem:[#allocation7 + $0x4] ss:$8 sps:$4 sm:$0xff]   ;;  %v730_v21 = vld [vmem:[#allocation7] ss:$8 sps:$4 sm:$0xff]  }
  0x39   :  { %373 = vmatpush1.bf16.msra.mxu1 %v712_v9  ;;  %v731_v22 = vld [vmem:[#allocation7 + $0xf4] ss:$8 sps:$4 sm:$0xff]   ;;  %v733_v23 = vld [vmem:[#allocation7 + $0xf0] ss:$8 sps:$4 sm:$0xff]   ;;  %v734_v24 = vld [vmem:[#allocation7 + $0xe4] ss:$8 sps:$4 sm:$0xff]  }
  0x3a   :  { %374 = vmatprep.subr.bf16.mxu1 %v713_v10  ;;  %v736_v25 = vld [vmem:[#allocation7 + $0xe0] ss:$8 sps:$4 sm:$0xff]   ;;  %v737_v26 = vld [vmem:[#allocation7 + $0xd4] ss:$8 sps:$4 sm:$0xff]   ;;  %v739_v27 = vld [vmem:[#allocation7 + $0xd0] ss:$8 sps:$4 sm:$0xff]  }
  0x3b   :  { %v740_v28 = vld [vmem:[#allocation7 + $0xc4] ss:$8 sps:$4 sm:$0xff]   ;;  %v742_v29 = vld [vmem:[#allocation7 + $0xc0] ss:$8 sps:$4 sm:$0xff]   ;;  %v743_v30 = vld [vmem:[#allocation7 + $0xb4] ss:$8 sps:$4 sm:$0xff]  }
  0x3c   :  { %v745_v31 = vld [vmem:[#allocation7 + $0xb0] ss:$8 sps:$4 sm:$0xff]   ;;  %v746_v32 = vld [vmem:[#allocation7 + $0xa4] ss:$8 sps:$4 sm:$0xff]   ;;  %v748_v33 = vld [vmem:[#allocation7 + $0xa0] ss:$8 sps:$4 sm:$0xff]  }
  0x3d   :  { %375 = vmatpush1.bf16.msra.mxu1 %v715_v11  ;;  %v749_v34 = vld [vmem:[#allocation7 + $0x94] ss:$8 sps:$4 sm:$0xff]   ;;  %v751_v35 = vld [vmem:[#allocation7 + $0x90] ss:$8 sps:$4 sm:$0xff]   ;;  %v752_v36 = vld [vmem:[#allocation7 + $0x84] ss:$8 sps:$4 sm:$0xff]  }
  0x3e   :  { %376 = vmatprep.subr.bf16.mxu1 %v716_v12  ;;  %v754_v37 = vld [vmem:[#allocation7 + $0x80] ss:$8 sps:$4 sm:$0xff]   ;;  %v755_v38 = vld [vmem:[#allocation8 + $0x78] sm:$0xff]   ;;  %v757_v40 = vld [vmem:[#allocation8 + $0x70] sm:$0xff]   ;;  %v94_v49 = vshrl.u32 %v83_v48, 7  ;;  %s892_s25 = smov [#allocation10]  }
  0x3f   :  { %v756_v39 = vld [vmem:[#allocation8 + $0x38] sm:$0xff]   ;;  %672 = vmatprep.subr.bf16.mxu0 %v755_v38  ;;  %v758_v41 = vld [vmem:[#allocation8 + $0x30] sm:$0xff]   ;;  %v759_v42 = vld [vmem:[#allocation8 + $0x68] sm:$0xff]   ;;  %s606_s26 = sshll.u32 %s892_s25, 4  ;;  %s607_s26 = int_to_ptr.vmem [resolvable:$true] %s606_s26 }
  0x40   :  { %673 = vmatpush3.bf16.msra.mxu0 %v756_v39  ;;  %v760_v43 = vld [vmem:[#allocation8 + $0x28] sm:$0xff]   ;;  %v761_v44 = vld [vmem:[#allocation8 + $0x60] sm:$0xff]   ;;  %v763_v46 = vld [vmem:[#allocation8 + $0x58] sm:$0xff]   ;;  %v99_v50 = vsub.s32 1, %v94_v49  ;;  %v95_v51 = vsub.s32 0, %v94_v49  ;;  %p860_p7 = scmp.lt.s32.totalorder %s607_s26, %s607_s26 }
  0x41   :  { %377 = vmatpush1.bf16.msra.mxu1 %v718_v13  ;;  %674 = vmatprep.subr.bf16.mxu0 %v757_v40  ;;  %v762_v45 = vld [vmem:[#allocation8 + $0x20] sm:$0xff]   ;;  %v764_v47 = vld [vmem:[#allocation8 + $0x18] sm:$0xff]   ;;  %v765_v5 = vld [vmem:[#allocation8 + $0x50] sm:$0xff]  }
  0x42   :  { %378 = vmatprep.subr.bf16.mxu1 %v719_v14  ;;  %v91_v52 = vld [vmem:[%s973_s2] sm:$0x3]  ;;  %v766_v6 = vld [vmem:[#allocation8 + $0x10] sm:$0xff]   ;;  %v767_v7 = vld [vmem:[#allocation8 + $0x48] sm:$0xff]  }
  0x43   :  { %v100_v54 = vrot.slane %v91_v52, %v99_v50  ;;  %v96_v55 = vrot.slane %v91_v52, %v95_v51  ;;  %v768_v8 = vld [vmem:[#allocation8 + $0x8] sm:$0xff]   ;;  %v769_v9 = vld [vmem:[#allocation8 + $0x40] sm:$0xff]  }
  0x44   :  { %675 = vmatpush3.bf16.msra.mxu0 %v758_v41  ;;  %v770_v10 = vld [vmem:[#allocation8] sm:$0xff]  }
  0x45   :  { %379 = vmatpush1.bf16.msra.mxu1 %v721_v15  ;;  %676 = vmatprep.subr.bf16.mxu0 %v759_v42  ;;  %v198_v11 = vld [vmem:[%s975_s4] sm:$0x3] }
  0x46   :  { %380 = vmatprep.subr.bf16.mxu1 %v722_v16  ;;  %v207_v13 = vrot.slane %v198_v11, %v99_v50  ;;  %v203_v14 = vrot.slane %v198_v11, %v95_v51 }
  0x48   :  { %677 = vmatpush3.bf16.msra.mxu0 %v760_v43 }
  0x49   :  { %381 = vmatpush1.bf16.msra.mxu1 %v724_v17  ;;  %678 = vmatprep.subr.bf16.mxu0 %v761_v44 }
  0x4a   :  { %382 = vmatprep.subr.bf16.mxu1 %v725_v18 }
  0x4c   :  { %679 = vmatpush3.bf16.msra.mxu0 %v762_v45 }
  0x4d   :  { %383 = vmatpush1.bf16.msra.mxu1 %v727_v19  ;;  %680 = vmatprep.subr.bf16.mxu0 %v763_v46 }
  0x4e   :  { %384 = vmatprep.subr.bf16.mxu1 %v728_v20 }
  0x50   :  { %681 = vmatpush3.bf16.msra.mxu0 %v764_v47 }
  0x51   :  { %385 = vmatpush1.bf16.msra.mxu1 %v730_v21  ;;  %682 = vmatprep.subr.bf16.mxu0 %v765_v5 }
  0x52   :  { %386 = vmatprep.subr.bf16.mxu1 %v731_v22 }
  0x54   :  { %683 = vmatpush3.bf16.msra.mxu0 %v766_v6 }
  0x55   :  { %387 = vmatpush2.bf16.msra.mxu1 %v733_v23  ;;  %684 = vmatprep.subr.bf16.mxu0 %v767_v7 }
  0x56   :  { %388 = vmatprep.subr.bf16.mxu1 %v734_v24 }
  0x58   :  { %685 = vmatpush3.bf16.msra.mxu0 %v768_v8 }
  0x59   :  { %389 = vmatpush2.bf16.msra.mxu1 %v736_v25  ;;  %686 = vmatprep.subr.bf16.mxu0 %v769_v9 }
  0x5a   :  { %390 = vmatprep.subr.bf16.mxu1 %v737_v26 }
  0x5c   :  { %687 = vmatpush3.bf16.msra.mxu0 %v770_v10 }
  0x5d   :  { %391 = vmatpush2.bf16.msra.mxu1 %v739_v27 }
  0x5e   :  { %392 = vmatprep.subr.bf16.mxu1 %v740_v28 }
  0x61   :  { %393 = vmatpush2.bf16.msra.mxu1 %v742_v29  ;;  %v655_v29 = vld [vmem:[%s977_s6] ss:$0 sm:$0xff]  ;;  %s855_s6 = scalar_lea.vmem %s607_s26, 256 }
  0x62   :  { %394 = vmatprep.subr.bf16.mxu1 %v743_v30  ;;  %p856_p6 = scmp.ne.s32.totalorder %s607_s26, %s855_s6  ;;  %p861_p8 = scmp.lt.s32.totalorder %s855_s6, %s855_s6 }
  0x64   :  { %p862_p9 = por %p861_p8, %p860_p7 }
  0x65   :  { %395 = vmatpush2.bf16.msra.mxu1 %v745_v31 }
  0x66   :  { %396 = vmatprep.subr.bf16.mxu1 %v746_v32  ;;  %p863_p10 = pnand %p862_p9, %p856_p6 }
  0x69   :  { %397 = vmatpush2.bf16.msra.mxu1 %v748_v33 }
  0x6a   :  { %398 = vmatprep.subr.bf16.mxu1 %v749_v34 }
  0x6d   :  { %399 = vmatpush2.bf16.msra.mxu1 %v751_v35 }
  0x6e   :  { %400 = vmatprep.subr.bf16.mxu1 %v752_v36 }
  0x71   :  { %401 = vmatpush2.bf16.msra.mxu1 %v754_v37  ;;  %v84_v37 = vand.u32 127, %v83_v48 }
  0x73   :  { %vm85_vm1 = vcmp.lt.s32.totalorder %v84_v37, 4 }
  0xf7   :  { %v151_v53 = vpop.f32.mrf.mxu0 }
  0xf8   :  { %v152_v60 = vadd.f32 %v151_v53, %v96_v55 }
  0xf9   :  { %v153_v56 = vpop.f32.mrf.mxu0 }
  0xfa   :  { %v154_v58 = vadd.f32 %v153_v56, %v100_v54  ;;  %v160_v2 = vmax.f32 %v152_v60, 0.0 }
  0xfb   :  { %v155_v57 = vpop.f32.mrf.mxu0 }
  0xfc   :  { %v156_v59 = vadd.f32 %v155_v57, %v96_v55  ;;  %v161_v0 = vmax.f32 %v154_v58, 0.0 }
  0xfd   :  { %v157_v61 = vpop.f32.mrf.mxu0 }
  0xfe   :  { %v158_v62 = vadd.f32 %v157_v61, %v100_v54  ;;  %v162_v63 = vmax.f32 %v156_v59, 0.0 }
 0x100   :  { %v163_v1 = vmax.f32 %v158_v62, 0.0  ;;  %v164_v4 = vpack.c.bf16 %v162_v63, %v160_v2 }
 0x102   :  { %v165_v3 = vpack.c.bf16 %v163_v1, %v161_v0 }
 0x104   :  { %402 = vmatprep.mubr.bf16.mxu1 %v165_v3 }
 0x105   :  { %403 = vmatmul.mubr.bf16.vlgmr.msra.gmra.mxu1 %v164_v4 }
 0x1c5   :  { %v404_v12 = vpop.f32.mrf.mxu1 }
 0x1c6   :  { %v405_v19 = vadd.f32 %v404_v12, %v203_v14 }
 0x1c7   :  { %v406_v15 = vpop.f32.mrf.mxu1 }
 0x1c8   :  { %v407_v17 = vadd.f32 %v406_v15, %v207_v13  ;;  %v413_v25 = vmax.f32 %v405_v19, 0.0 }
 0x1c9   :  { %v408_v16 = vpop.f32.mrf.mxu1 }
 0x1ca   :  { %v409_v18 = vadd.f32 %v408_v16, %v203_v14  ;;  %v414_v23 = vmax.f32 %v407_v17, 0.0 }
 0x1cb   :  { %v410_v20 = vpop.f32.mrf.mxu1 }
 0x1cc   :  { %v411_v21 = vadd.f32 %v410_v20, %v207_v13  ;;  %v415_v22 = vmax.f32 %v409_v18, 0.0 }
 0x1ce   :  { %v416_v24 = vmax.f32 %v411_v21, 0.0  ;;  %v417_v27 = vpack.c.bf16 %v415_v22, %v413_v25 }
 0x1d0   :  { %v418_v26 = vpack.c.bf16 %v416_v24, %v414_v23 }
 0x1d2   :  { %586 = vmatprep.mubr.bf16.mxu0 %v418_v26 }
 0x1d3   :  { %587 = vmatmul.mubr.bf16.vlgmr.msra.gmra.mxu0 %v417_v27 }
 0x293   :  { %v688_v28 = vpop.f32.mrf.mxu0 }
 0x295   :  { %v689_v30 = vpop.f32.mrf.mxu0 }
 0x296   :  { %v690_v31 = vadd.f32 %v689_v30, %v688_v28 }
 0x297   :  { %v691_v32 = vpop.f32.mrf.mxu0 }
 0x298   :  { %v589_v33 = vadd.f32 %v690_v31, %v655_v29 }
 0x299   :  { %v692_v34 = vpop.f32.mrf.mxu0 }
 0x29a   :  { %771 = vtanh.f32 %v589_v33  ;;  %v693_v35 = vadd.f32 %v692_v34, %v691_v32 }
 0x29c   :  { %v592_v36 = vadd.f32 %v693_v35, %v655_v29 }
 0x29e   :  { %773 = vtanh.f32 %v592_v36 }
 0x2a7   :  { %v772_v38 = vpop.eup %771 }
 0x2a8   :  { %v597_v39 = vsel %vm85_vm1, %v772_v38, %v589_v33 }
 0x2a9   :  { %599 = vst [vmem:[#allocation10] sm:$0xff] %v597_v39 }
 0x2ab   :  { %v774_v40 = vpop.eup %773 }
 0x2ac   :  { %v598_v41 = vsel %vm85_vm1, %v774_v40, %v592_v36 }
 0x2ad   :  { %600 = vst [vmem:[#allocation10 + $0x8] sm:$0xff] %v598_v41 }
 0x2ae   :  { %866 = shalt.err (!%p863_p10)
}
 0x2af   :  { %612 = dma.vmem_to_hbm [thread:$0]  %s607_s26, 256, %s978_s7, [#allocation4], %s885_s29, %s885_s29, %s886_s30  }
 0x2b0   :  { %881 = dma.done.wait [#allocation4], 256  }
 0x2b1   :  { %882 = vsyncadd [#allocation4], 4294967040 }
 0x2b2   :  { %616 = vsyncpa [#allocation3], 1 }
 0x2b3   :  { %617 = vsyncpa [#allocation6], 1 }
 0x2b4   :  { %618 = vsyncpa [#allocation9], 1 }
 0x2b5   :  { %619 = vsyncpa [#allocation4], 1 }

</bundles_post_ra>
